<compile_context>
chip_gen: v7x
topology: tpu7x:2x2x1
jax: 0.10.0
libtpu: 0.0.40
codegen_flags: <defaults>
</compile_context>

<pallas_src>
import functools

import jax
import jax.numpy as jnp
from jax.experimental import pallas as pl
from jax.experimental.pallas import tpu as pltpu


_LANE = 128
_FALLBACK_VMEM_BYTES = 64 * 1024 * 1024   # smallest per-core VMEM across v5e/v6e/v7x


def _round_up(x, m):
    return ((x + m - 1) // m) * m


def _tpu_vmem_and_cores():
    """Best-effort (VMEM bytes, TensorCores-per-chip) query; conservative fallback."""
    vmem = _FALLBACK_VMEM_BYTES
    cores = 1
    try:
        info = pltpu.get_tpu_info()
        for attr in ("vmem_capacity_bytes", "vmem_bytes", "vmem_size_bytes"):
            v = getattr(info, attr, None)
            if v:
                vmem = int(v)
                break
        for attr in ("num_cores", "tensorcore_count", "num_tensorcores", "cores_per_chip"):
            v = getattr(info, attr, None)
            if v:
                cores = max(1, int(v))
                break
    except Exception:
        pass
    return vmem, cores


def _avg_pool_kernel(x_ref, o_ref, *, inv_hw):
    """num_k == 1 path: grid (num_i,), block covers the full H*W extent."""
    x = x_ref[...].astype(jnp.float32)
    o_ref[...] = (jnp.sum(x, axis=-1, keepdims=True) * inv_hw).astype(o_ref.dtype)


def _avg_pool_chunked_kernel(x_ref, o_ref, acc_ref, *, inv_hw, hw, tk, needs_mask):
    """Chunked path: grid (num_i, num_k), f32 accumulator over H*W chunks."""
    k = pl.program_id(1)

    @pl.when(k == 0)
    def _init():
        acc_ref[...] = jnp.zeros_like(acc_ref)

    x = x_ref[...].astype(jnp.float32)
    if needs_mask:
        lane = jax.lax.broadcasted_iota(jnp.int32, x.shape, 1) + k * tk
        x = jnp.where(lane < hw, x, 0.0)
    acc_ref[...] += jnp.sum(x, axis=-1, keepdims=True)

    @pl.when(k == pl.num_programs(1) - 1)
    def _finalize():
        o_ref[...] = (acc_ref[...] * inv_hw).astype(o_ref.dtype)


def fast_avg_pool_2d(x, flatten=False, *, block_budget_bytes=None, vmem_limit_bytes=None):
    """JAX/Pallas equivalent of FastAvgPool2d.forward.

    x: (N, C, H, W) -> (N, C) if flatten else (N, C, 1, 1)
    """
    n, c, h, w = x.shape
    rows = n * c
    hw = h * w
    itemsize = jnp.dtype(x.dtype).itemsize
    sublane = max(8, 32 // max(itemsize, 1))      # 8 for f32, 16 for bf16, 32 for int8

    vmem_cap, num_cores = _tpu_vmem_and_cores()
    if vmem_limit_bytes is None:
        vmem_limit_bytes = (vmem_cap * 3) // 4     # 96 MiB on 128 MiB chips, 48 MiB on v7x
    if block_budget_bytes is None:
        block_budget_bytes = (vmem_cap * 9) // 16  # 72 MiB / 36 MiB

    x2 = x.reshape(rows, hw)
    inv_hw = float(1.0 / hw)

    # --- per-row VMEM bookkeeping (lane-padded widths, as stored in VMEM) ---
    hw_vmem = _round_up(hw, _LANE)
    out_row_bytes = 2 * _LANE * itemsize           # double-buffered (rt, 1) output rows
    acc_row_bytes = _LANE * 4                      # f32 accumulator (chunked path only)

    # --- H*W chunking decision -------------------------------------------------
    if sublane * (2 * hw_vmem * itemsize + out_row_bytes) <= block_budget_bytes:
        num_k, tk = 1, hw
        per_row_bytes = 2 * hw_vmem * itemsize + out_row_bytes
    else:
        thin = out_row_bytes + acc_row_bytes
        tk_max = max(
            _LANE,
            ((block_budget_bytes // sublane - thin) // (2 * itemsize)) // _LANE * _LANE,
        )
        hw128 = _round_up(hw, _LANE)
        num_k = pl.cdiv(hw128, tk_max)
        tk = _round_up(pl.cdiv(hw128, num_k), _LANE)
        per_row_bytes = 2 * tk * itemsize + thin

    # --- row tile: as large as the budget allows (multiple of sublane packing) --
    rt_max = max(sublane, (block_budget_bytes // per_row_bytes) // sublane * sublane)
    num_i = pl.cdiv(rows, rt_max)
    if num_cores > 1:
        if num_i < num_cores and rows >= num_cores * sublane:
            num_i = num_cores                       # let v7x shard rows across both TCs
        if num_i > 1:
            num_i = _round_up(num_i, num_cores)     # balanced split across cores
    rt = _round_up(pl.cdiv(rows, num_i), sublane)
    num_i = pl.cdiv(rows, rt)                       # no fully out-of-range blocks

    cost = pl.CostEstimate(
        flops=rows * hw,
        transcendentals=0,
        bytes_accessed=rows * hw * itemsize + rows * itemsize,
    )

    if num_k == 1 and tk == hw:
        kernel = functools.partial(_avg_pool_kernel, inv_hw=inv_hw)
        out = pl.pallas_call(
            kernel,
            out_shape=jax.ShapeDtypeStruct((rows, 1), x.dtype),
            grid_spec=pltpu.PrefetchScalarGridSpec(
                num_scalar_prefetch=0,
                grid=(num_i,),
                in_specs=[pl.BlockSpec((rt, hw), lambda i: (i, 0))],
                out_specs=pl.BlockSpec((rt, 1), lambda i: (i, 0)),
            ),
            compiler_params=pltpu.CompilerParams(
                dimension_semantics=("parallel",),
                vmem_limit_bytes=vmem_limit_bytes,
            ),
            cost_estimate=cost,
        )(x2)
    else:
        kernel = functools.partial(
            _avg_pool_chunked_kernel,
            inv_hw=inv_hw, hw=hw, tk=tk, needs_mask=(num_k * tk != hw),
        )
        out = pl.pallas_call(
            kernel,
            out_shape=jax.ShapeDtypeStruct((rows, 1), x.dtype),
            grid_spec=pltpu.PrefetchScalarGridSpec(
                num_scalar_prefetch=0,
                grid=(num_i, num_k),
                in_specs=[pl.BlockSpec((rt, tk), lambda i, k: (i, k))],
                out_specs=pl.BlockSpec((rt, 1), lambda i, k: (i, 0)),
                scratch_shapes=[pltpu.VMEM((rt, 1), jnp.float32)],
            ),
            compiler_params=pltpu.CompilerParams(
                dimension_semantics=("parallel", "arbitrary"),
                vmem_limit_bytes=vmem_limit_bytes,
            ),
            cost_estimate=cost,
        )(x2)

    if flatten:
        return out.reshape(n, c)
    return out.reshape(n, c, 1, 1)


if __name__ == "__main__":
    k0, k1 = jax.random.split(jax.random.PRNGKey(0))

    # Primary test shape from the module spec.
    x = jax.random.normal(k0, (2, 4, 16, 16), dtype=jnp.float32)

    y = jax.block_until_ready(fast_avg_pool_2d(x, flatten=False))        # (N,C,1,1)
    y_flat = jax.block_until_ready(fast_avg_pool_2d(x, flatten=True))    # (N,C)

    ref = jnp.mean(x.reshape(2, 4, -1), axis=-1)
    assert y.shape == (2, 4, 1, 1)
    assert y_flat.shape == (2, 4)
    assert jnp.allclose(y.reshape(2, 4), ref, atol=1e-5)
    assert jnp.allclose(y_flat, ref, atol=1e-5)

    # Ragged row blocks + hw not a multiple of 128 (7x7 pool).
    x2 = jax.random.normal(k1, (2, 12, 7, 7), dtype=jnp.float32)
    y2 = jax.block_until_ready(fast_avg_pool_2d(x2, flatten=True))
    ref2 = jnp.mean(x2.reshape(2, 12, -1), axis=-1)
    assert y2.shape == (2, 12)
    assert jnp.allclose(y2, ref2, atol=1e-5)

    # H*W-chunked accumulator path (num_k == 2), forced via a tiny block budget.
    y3 = jax.block_until_ready(
        fast_avg_pool_2d(x, flatten=True, block_budget_bytes=16 * 1024))
    assert jnp.allclose(y3, ref, atol=1e-5)

    # Chunked path with a ragged, in-kernel-masked last H*W chunk (tk=128 > hw=49).
    y4 = jax.block_until_ready(
        fast_avg_pool_2d(x2, flatten=True, block_budget_bytes=8 * 1024))
    assert jnp.allclose(y4, ref2, atol=1e-5)

    print("KERNEL_OK")
</pallas_src>

<mosaic_0001>
module attributes {stable_mosaic.version = 11 : i64} {
  func.func @_avg_pool_kernel(%arg0: i32, %arg1: memref<8x256xf32, #tpu.memory_space<vmem>>, %arg2: memref<8x1xf32, #tpu.memory_space<vmem>>) attributes {dimension_semantics = [#tpu.dimension_semantics<parallel>], iteration_bounds = array<i64: 1>, scalar_prefetch = 0 : i64, scratch_operands = 0 : i64, tpu.core_type = #tpu.core_type<tc>, window_params = [{transform_indices = @transform_0, window_bounds = array<i64: 8, 256>}, {transform_indices = @transform_1, window_bounds = array<i64: 8, 1>}]} {
    %c0 = arith.constant 0 : index
    %c0_0 = arith.constant 0 : index
    %0 = vector.load %arg1[%c0, %c0_0] : memref<8x256xf32, #tpu.memory_space<vmem>>, vector<8x256xf32>
    %cst = arith.constant dense<0.000000e+00> : vector<8xf32>
    %1 = vector.multi_reduction <add>, %0, %cst [1] : vector<8x256xf32> to vector<8xf32>
    %2 = vector.shape_cast %1 : vector<8xf32> to vector<8x1xf32>
    %cst_1 = arith.constant 3.906250e-03 : f32
    %3 = vector.broadcast %cst_1 : f32 to vector<8x1xf32>
    %4 = arith.mulf %2, %3 : vector<8x1xf32>
    %c0_2 = arith.constant 0 : index
    %c0_3 = arith.constant 0 : index
    %5 = vector.load %arg2[%c0_2, %c0_3] : memref<8x1xf32, #tpu.memory_space<vmem>>, vector<8x1xf32>
    tpu.vector_store %arg2[%c0_2, %c0_3], %4 {strides = array<i32>} : memref<8x1xf32, #tpu.memory_space<vmem>>, vector<8x1xf32>,
    return
  }
  func.func @transform_0(%arg0: i32) -> (i32, i32) {
    %c0_i32 = arith.constant 0 : i32
    %c0_i32_0 = arith.constant 0 : i32
    return %arg0, %c0_i32 : i32, i32
  }
  func.func @transform_1(%arg0: i32) -> (i32, i32) {
    %c0_i32 = arith.constant 0 : i32
    %c0_i32_0 = arith.constant 0 : i32
    return %arg0, %c0_i32 : i32, i32
  }
}

</mosaic_0001>

<bundles_post_ra>
// kernel: tpu_custom_call.1
= control target key start
LH: loop header
LB: loop body
LE: loop exit
PB: predicated region body
PF: predicated region fallthrough
CT: control target
= control target key end

     0   :  { %6 = vsyncpa [#allocation3], 0  ;;  %s58_s6 = smov [#allocation2]   ;;  %s84_s0 = inlined_call_operand.hbm [shape: f32[8,256], index: 0, kind: input, shape index: {}]   ;;  %s85_s1 = inlined_call_operand.vmem [shape: f32[8,1], index: 1, kind: output, shape index: {}]  }
   0x1   :  { %s13_s7 = sshll.u32 %s58_s6, 4  ;;  %s34_s10 = scalar_lea.hbm %s84_s0, 256  ;;  %s14_s7 = int_to_ptr.vmem [resolvable:$true] %s13_s7 }
   0x2   :  { %p35_p0 = scmp.ne.s32.totalorder %s84_s0, %s34_s10  ;;  %p38_p1 = scmp.lt.u32.totalorder %s34_s10, %s84_s0 }
   0x4   :  { %p40_p2 = pnand %p38_p1, %p35_p0 }
   0x6   :  { %43 = shalt.err (!%p40_p2)
}
   0x7   :  { %s44_s15 = scalar_lea.vmem %s14_s7, 256  ;;  %p49_p4 = scmp.lt.s32.totalorder %s14_s7, %s14_s7 }
   0x8   :  { %p45_p3 = scmp.ne.s32.totalorder %s14_s7, %s44_s15  ;;  %p50_p5 = scmp.lt.s32.totalorder %s44_s15, %s44_s15 }
   0xa   :  { %p51_p6 = por %p50_p5, %p49_p4 }
   0xc   :  { %p52_p7 = pnand %p51_p6, %p45_p3 }
   0xe   :  { %55 = shalt.err (!%p52_p7)
}
   0xf   :  { %16 = dma.hbm_to_vmem [thread:$0]  %s84_s0, 256, %s14_s7, [#allocation3]  }
  0x10   :  { %56 = dma.done.wait [#allocation3], 256  }
  0x11   :  { %57 = vsyncadd [#allocation3], 4294967040  ;;  %v20_v0 = vld [vmem:[#allocation2] sm:$0xff]  ;;  %v21_v1 = vld [vmem:[#allocation2 + $0x8] sm:$0xff]  ;;  %vm26_vm0 = vcmask 7168  }
  0x12   :  { %v22_v2 = vadd.f32 %v21_v1, %v20_v0 }
  0x14   :  { %23 = vadd.xlane.f32.xlu0 %v22_v2 }
  0xa1   :  { %v24_v3 = vpop.xlane.xlu0 %23 }
  0xa2   :  { %v25_v4 = vmul.f32 0.00390625, %v24_v3 }
  0xa4   :  { %27 = vst.msk [vmem:[%s85_s1] sm:$0xff] %vm26_vm0, %v25_v4 }
  0xa5   :  { %32 = vsyncpa [#allocation3], 1 }

</bundles_post_ra>
